<compile_context>
chip_gen: v6e
topology: v6e:2x2x1
jax: 0.10.0
libtpu: 0.0.40
codegen_flags: <defaults>
</compile_context>

<pallas_src>
import functools

import numpy as np
import jax
import jax.numpy as jnp
from jax.experimental import pallas as pl
from jax.experimental.pallas import tpu as pltpu


# -----------------------------------------------------------------------------------
# AutomaticWeightedLoss — kept as plain jnp per the performance review (a ~10-op
# expression must not be a standalone pallas_call; XLA fuses it with its producers).
# NOTE: the reference forward() constructs AutomaticWeightedLoss(2) but never applies
# it, so this helper is not used by contrastive_disentanglement_loss below.
def automatic_weighted_loss(losses, params):
    losses = jnp.asarray(losses, jnp.float32)
    p2 = jnp.asarray(params, jnp.float32) ** 2
    return jnp.sum(0.5 / p2 * losses + jnp.log(1.0 + p2))


# -----------------------------------------------------------------------------------
# STFT helpers (plain JAX wrapper code).
# TODO(synk): the reference `stft` module is an external dependency of the spec; a
# standard Hann-window magnitude/phase STFT is used here.  FFT / atan2 have no Pallas
# TPU equivalent, so this stays outside the kernel.
def _hann_window(n_fft):
    n = np.arange(n_fft)
    return (0.5 - 0.5 * np.cos(2.0 * np.pi * n / n_fft)).astype(np.float32)


def _frame_indices(total_len, n_fft, hop):
    num_frames = (total_len - n_fft) // hop + 1
    return np.arange(num_frames)[:, None] * hop + np.arange(n_fft)[None, :]


def _stft_phase_jax(x, n_fft, hop, window):
    if x.ndim == 3:                                    # (B, 1, T) -> (B, T)
        x = x.reshape(x.shape[0], -1)
    idx = _frame_indices(x.shape[-1], n_fft, hop)
    frames = x[:, idx] * window[None, None, :]         # (B, F, n_fft)
    spec = jnp.fft.rfft(frames.astype(jnp.float32), axis=-1)
    return jnp.abs(spec), jnp.angle(spec)              # mags, phase


# -----------------------------------------------------------------------------------
# Fused loss kernel: NT-Xent (cosine sim) + SI-SNR + alpha weighting, one invocation.
def _cdl_kernel(reps_ref, x12_ref, out_ref, *, temperature, alpha, eps):
    # reps_ref: (2B, D) f32  — [est_phase ; clean_phase] row-flattened phases (VMEM)
    # x12_ref : (2, B, T) f32 — [x1 (estimate) ; x2 (clean, squeezed)] (VMEM)
    # out_ref : (1, 1) f32    — scalar loss (SMEM)
    reps = reps_ref[...]
    two_b = reps.shape[0]
    b = two_b // 2

    # ---- NT-Xent phase loss (cosine similarity, CE reduction='sum', / 2B) ----
    norm = jnp.sqrt(jnp.sum(reps * reps, axis=-1, keepdims=True))
    rn = reps / jnp.maximum(norm, 1e-8)
    sim = jnp.einsum("nd,md->nm", rn, rn,
                     preferred_element_type=jnp.float32)        # (2B, 2B) on the MXU
    logits = sim * (1.0 / temperature)

    row = jax.lax.broadcasted_iota(jnp.int32, (two_b, two_b), 0)
    col = jax.lax.broadcasted_iota(jnp.int32, (two_b, two_b), 1)
    diag_mask = row == col
    pos_mask = jnp.logical_or(col == row + b, col == row - b)   # positive at (i, i±B)

    # CrossEntropy(label=0) over [positive, negatives] == -pos + logsumexp(row \ diag)
    masked = jnp.where(diag_mask, -1e30, logits)
    m = jnp.max(masked, axis=-1, keepdims=True)
    lse = m + jnp.log(jnp.sum(jnp.exp(masked - m), axis=-1, keepdims=True))
    pos_logit = jnp.sum(jnp.where(pos_mask, logits, 0.0), axis=-1, keepdims=True)
    phase_loss = jnp.sum(lse - pos_logit) / two_b

    # ---- SI-SNR loss (negated mean SNR) ----
    s1 = x12_ref[0]                                             # (B, T) estimate
    s2 = x12_ref[1]                                             # (B, T) clean
    bsz = s1.shape[0]
    s1_s2 = jnp.sum(s1 * s2, axis=-1, keepdims=True)
    s2_s2 = jnp.sum(s2 * s2, axis=-1, keepdims=True)
    s_target = s1_s2 / (s2_s2 + eps) * s2
    e_noise = s1 - s_target
    target_norm = jnp.sum(s_target * s_target, axis=-1, keepdims=True)
    noise_norm = jnp.sum(e_noise * e_noise, axis=-1, keepdims=True)
    inv_ln10 = 1.0 / float(np.log(10.0))
    snr = 10.0 * inv_ln10 * jnp.log(target_norm / (noise_norm + eps) + eps)
    sisnr_loss = -(jnp.sum(snr) / bsz)

    # ---- fixed alpha weighting (AutomaticWeightedLoss is unused in the reference) ----
    out_ref[0, 0] = (1.0 - alpha) * sisnr_loss + alpha * phase_loss


def contrastive_disentanglement_loss(x1, x2, *, batch_size, n_fft=64, hop=32,
                                     temperature=0.2, alpha=0.5, eps=1e-8):
    """Matches contrastive_disentanglement_loss.forward.
    x1: estimated waveform (B, T); x2: clean waveform with channel dim (B, 1, T)."""
    window = jnp.asarray(_hann_window(n_fft))

    # mags are computed but unused in the reference forward; only phases are needed.
    _, clean_phase = _stft_phase_jax(x2, n_fft, hop, window)
    _, est_phase = _stft_phase_jax(x1, n_fft, hop, window)
    est_phase = est_phase.reshape(batch_size, -1).astype(jnp.float32)
    clean_phase = clean_phase.reshape(batch_size, -1).astype(jnp.float32)

    # NTXentLoss.forward(zis=clean_phase, zjs=est_phase) concatenates [zjs ; zis].
    reps = jnp.concatenate([est_phase, clean_phase], axis=0)          # (2B, D)
    x1f = x1.astype(jnp.float32).reshape(batch_size, -1)              # (B, T)
    x2f = x2.astype(jnp.float32).reshape(batch_size, -1)              # torch.squeeze(x2, 1)
    x12 = jnp.stack([x1f, x2f], axis=0)                               # (2, B, T) one DMA

    two_b, d = reps.shape
    t = x1f.shape[-1]
    cost = pl.CostEstimate(
        flops=int(2 * two_b * two_b * d + 6 * two_b * d + 10 * batch_size * t),
        transcendentals=int(two_b * two_b + 2 * two_b + batch_size),
        bytes_accessed=int(4 * (two_b * d + 2 * batch_size * t + 1)),
    )

    kernel = functools.partial(_cdl_kernel, temperature=float(temperature),
                               alpha=float(alpha), eps=float(eps))
    out = pl.pallas_call(
        kernel,
        out_shape=jax.ShapeDtypeStruct((1, 1), jnp.float32),
        in_specs=[
            pl.BlockSpec(memory_space=pltpu.VMEM),
            pl.BlockSpec(memory_space=pltpu.VMEM),
        ],
        out_specs=pl.BlockSpec(memory_space=pltpu.SMEM),
        cost_estimate=cost,
    )(reps, x12)
    return out.reshape(())


# -----------------------------------------------------------------------------------
# Pure numpy reference mirroring the PyTorch code path exactly.
def _reference_loss(x1, x2, batch_size, n_fft, hop, temperature=0.2, alpha=0.5, eps=1e-8):
    x1 = np.asarray(x1, dtype=np.float64)
    x2 = np.asarray(x2, dtype=np.float64)
    window = _hann_window(n_fft).astype(np.float64)

    def stft_phase(sig):
        if sig.ndim == 3:
            sig = sig.reshape(sig.shape[0], -1)
        idx = _frame_indices(sig.shape[-1], n_fft, hop)
        frames = sig[:, idx] * window[None, None, :]
        return np.angle(np.fft.rfft(frames, axis=-1))

    clean_phase = stft_phase(x2).reshape(batch_size, -1)
    est_phase = stft_phase(x1).reshape(batch_size, -1)

    # NT-Xent (cosine similarity), torch path with positives/negatives gather.
    reps = np.concatenate([est_phase, clean_phase], axis=0)
    rn = reps / np.maximum(np.linalg.norm(reps, axis=-1, keepdims=True), 1e-8)
    sim = rn @ rn.T
    B = batch_size
    l_pos = np.diagonal(sim, offset=B)
    r_pos = np.diagonal(sim, offset=-B)
    positives = np.concatenate([l_pos, r_pos]).reshape(2 * B, 1)
    mask = (1 - (np.eye(2 * B) + np.eye(2 * B, k=-B) + np.eye(2 * B, k=B))).astype(bool)
    negatives = sim[mask].reshape(2 * B, -1)
    logits = np.concatenate([positives, negatives], axis=1) / temperature
    m = logits.max(axis=1, keepdims=True)
    lse = (m + np.log(np.exp(logits - m).sum(axis=1, keepdims=True)))[:, 0]
    phase_loss = np.sum(lse - logits[:, 0]) / (2 * B)

    # SI-SNR
    s1 = x1
    s2 = x2.reshape(batch_size, -1)
    s1_s2 = np.sum(s1 * s2, -1, keepdims=True)
    s2_s2 = np.sum(s2 * s2, -1, keepdims=True)
    s_target = s1_s2 / (s2_s2 + eps) * s2
    e_noise = s1 - s_target
    tn = np.sum(s_target ** 2, -1, keepdims=True)
    nn_ = np.sum(e_noise ** 2, -1, keepdims=True)
    snr = 10.0 * np.log10(tn / (nn_ + eps) + eps)
    sisnr_loss = -np.mean(snr)
    return float((1.0 - alpha) * sisnr_loss + alpha * phase_loss)


if __name__ == "__main__":
    B, T = 4, 512
    n_fft, hop = 64, 32

    key = jax.random.PRNGKey(0)
    k1, k2 = jax.random.split(key)
    x1 = jax.random.normal(k1, (B, T), dtype=jnp.float32)        # estimated waveform
    x2 = jax.random.normal(k2, (B, 1, T), dtype=jnp.float32)     # clean waveform (B,1,T)

    loss = contrastive_disentanglement_loss(x1, x2, batch_size=B, n_fft=n_fft, hop=hop)
    loss = jax.block_until_ready(loss)

    ref = _reference_loss(np.asarray(x1), np.asarray(x2), B, n_fft, hop)
    assert np.isfinite(float(loss)), float(loss)
    assert abs(float(loss) - ref) <= 1e-2 + 1e-2 * abs(ref), (float(loss), ref)

    print("KERNEL_OK")
</pallas_src>

<mosaic_0001>
module attributes {stable_mosaic.version = 11 : i64} {
  func.func @_cdl_kernel(%arg0: memref<8x495xf32, #tpu.memory_space<vmem>>, %arg1: memref<2x4x512xf32, #tpu.memory_space<vmem>>, %arg2: memref<1x1xf32, #tpu.memory_space<smem>>) attributes {dimension_semantics = [], scalar_prefetch = 0 : i64, scratch_operands = 0 : i64, tpu.core_type = #tpu.core_type<tc>} {
    %c0 = arith.constant 0 : index
    %c0_0 = arith.constant 0 : index
    %0 = vector.load %arg0[%c0, %c0_0] : memref<8x495xf32, #tpu.memory_space<vmem>>, vector<8x495xf32>
    %1 = arith.mulf %0, %0 : vector<8x495xf32>
    %cst = arith.constant dense<0.000000e+00> : vector<8xf32>
    %2 = vector.multi_reduction <add>, %1, %cst [1] : vector<8x495xf32> to vector<8xf32>
    %3 = vector.shape_cast %2 : vector<8xf32> to vector<8x1xf32>
    %4 = math.sqrt %3 : vector<8x1xf32>
    %cst_1 = arith.constant 9.99999993E-9 : f32
    %5 = vector.broadcast %cst_1 : f32 to vector<8x1xf32>
    %6 = arith.maximumf %4, %5 : vector<8x1xf32>
    %7 = vector.broadcast %6 : vector<8x1xf32> to vector<8x495xf32>
    %8 = arith.divf %0, %7 : vector<8x495xf32>
    "tpu.trace_start"() <{level = 10 : i32, message = "nd,md->nm"}> : () -> ()
    %cst_2 = arith.constant dense<0.000000e+00> : vector<8x8xf32>
    %9 = tpu.matmul %8, %8, %cst_2 {dimension_numbers = #tpu.dot_dimension_numbers<[1], [1], [0], [0], [0, 0, 1, 0], [], []>} : vector<8x495xf32>, vector<8x495xf32>, vector<8x8xf32> -> vector<8x8xf32>
    "tpu.trace_stop"() : () -> ()
    %cst_3 = arith.constant 5.000000e+00 : f32
    %10 = vector.broadcast %cst_3 : f32 to vector<8x8xf32>
    %11 = arith.mulf %9, %10 : vector<8x8xf32>
    %12 = tpu.iota {dimensions = array<i32: 0>} : vector<8x8xi32>
    %13 = tpu.iota {dimensions = array<i32: 1>} : vector<8x8xi32>
    %14 = arith.cmpi eq, %12, %13 : vector<8x8xi32>
    %c4_i32 = arith.constant 4 : i32
    %15 = vector.broadcast %c4_i32 : i32 to vector<8x8xi32>
    %16 = arith.addi %12, %15 : vector<8x8xi32>
    %17 = arith.cmpi eq, %13, %16 : vector<8x8xi32>
    %c4_i32_4 = arith.constant 4 : i32
    %18 = vector.broadcast %c4_i32_4 : i32 to vector<8x8xi32>
    %19 = arith.subi %12, %18 : vector<8x8xi32>
    %20 = arith.cmpi eq, %13, %19 : vector<8x8xi32>
    %21 = arith.ori %17, %20 : vector<8x8xi1>
    %cst_5 = arith.constant -1.000000e+30 : f32
    %22 = vector.broadcast %cst_5 : f32 to vector<8x8xf32>
    %23 = arith.select %14, %22, %11 : vector<8x8xi1>, vector<8x8xf32>
    %cst_6 = arith.constant dense<0xFF800000> : vector<8xf32>
    %24 = vector.multi_reduction <maximumf>, %23, %cst_6 [1] : vector<8x8xf32> to vector<8xf32>
    %25 = vector.shape_cast %24 : vector<8xf32> to vector<8x1xf32>
    %26 = vector.broadcast %25 : vector<8x1xf32> to vector<8x8xf32>
    %27 = arith.subf %23, %26 : vector<8x8xf32>
    %28 = math.exp %27 : vector<8x8xf32>
    %cst_7 = arith.constant dense<0.000000e+00> : vector<8xf32>
    %29 = vector.multi_reduction <add>, %28, %cst_7 [1] : vector<8x8xf32> to vector<8xf32>
    %30 = vector.shape_cast %29 : vector<8xf32> to vector<8x1xf32>
    %31 = math.log %30 : vector<8x1xf32>
    %32 = arith.addf %25, %31 : vector<8x1xf32>
    %cst_8 = arith.constant 0.000000e+00 : f32
    %33 = vector.broadcast %cst_8 : f32 to vector<8x8xf32>
    %34 = arith.select %21, %11, %33 : vector<8x8xi1>, vector<8x8xf32>
    %cst_9 = arith.constant dense<0.000000e+00> : vector<8xf32>
    %35 = vector.multi_reduction <add>, %34, %cst_9 [1] : vector<8x8xf32> to vector<8xf32>
    %36 = vector.shape_cast %35 : vector<8xf32> to vector<8x1xf32>
    %37 = arith.subf %32, %36 : vector<8x1xf32>
    %38 = vector.shape_cast %37 : vector<8x1xf32> to vector<1x8x1xf32>
    %cst_10 = arith.constant dense<0.000000e+00> : vector<1xf32>
    %39 = vector.multi_reduction <add>, %38, %cst_10 [1, 2] : vector<1x8x1xf32> to vector<1xf32>
    %40 = vector.shape_cast %39 : vector<1xf32> to vector<1x1x1xf32>
    %41 = vector.extract %40[0, 0, 0] : f32 from vector<1x1x1xf32>
    %cst_11 = arith.constant 8.000000e+00 : f32
    %42 = arith.divf %41, %cst_11 : f32
    %c0_12 = arith.constant 0 : index
    %c0_13 = arith.constant 0 : index
    %c0_14 = arith.constant 0 : index
    %43 = vector.load %arg1[%c0_12, %c0_13, %c0_14] : memref<2x4x512xf32, #tpu.memory_space<vmem>>, vector<1x4x512xf32>
    %44 = vector.shape_cast %43 : vector<1x4x512xf32> to vector<4x512xf32>
    %c1 = arith.constant 1 : index
    %c0_15 = arith.constant 0 : index
    %c0_16 = arith.constant 0 : index
    %45 = vector.load %arg1[%c1, %c0_15, %c0_16] : memref<2x4x512xf32, #tpu.memory_space<vmem>>, vector<1x4x512xf32>
    %46 = vector.shape_cast %45 : vector<1x4x512xf32> to vector<4x512xf32>
    %47 = arith.mulf %44, %46 : vector<4x512xf32>
    %cst_17 = arith.constant dense<0.000000e+00> : vector<4xf32>
    %48 = vector.multi_reduction <add>, %47, %cst_17 [1] : vector<4x512xf32> to vector<4xf32>
    %49 = vector.shape_cast %48 : vector<4xf32> to vector<4x1xf32>
    %50 = arith.mulf %46, %46 : vector<4x512xf32>
    %cst_18 = arith.constant dense<0.000000e+00> : vector<4xf32>
    %51 = vector.multi_reduction <add>, %50, %cst_18 [1] : vector<4x512xf32> to vector<4xf32>
    %52 = vector.shape_cast %51 : vector<4xf32> to vector<4x1xf32>
    %cst_19 = arith.constant 9.99999993E-9 : f32
    %53 = vector.broadcast %cst_19 : f32 to vector<4x1xf32>
    %54 = arith.addf %52, %53 : vector<4x1xf32>
    %55 = arith.divf %49, %54 : vector<4x1xf32>
    %56 = vector.broadcast %55 : vector<4x1xf32> to vector<4x512xf32>
    %57 = arith.mulf %56, %46 : vector<4x512xf32>
    %58 = arith.subf %44, %57 : vector<4x512xf32>
    %59 = arith.mulf %57, %57 : vector<4x512xf32>
    %cst_20 = arith.constant dense<0.000000e+00> : vector<4xf32>
    %60 = vector.multi_reduction <add>, %59, %cst_20 [1] : vector<4x512xf32> to vector<4xf32>
    %61 = vector.shape_cast %60 : vector<4xf32> to vector<4x1xf32>
    %62 = arith.mulf %58, %58 : vector<4x512xf32>
    %cst_21 = arith.constant dense<0.000000e+00> : vector<4xf32>
    %63 = vector.multi_reduction <add>, %62, %cst_21 [1] : vector<4x512xf32> to vector<4xf32>
    %64 = vector.shape_cast %63 : vector<4xf32> to vector<4x1xf32>
    %cst_22 = arith.constant 9.99999993E-9 : f32
    %65 = vector.broadcast %cst_22 : f32 to vector<4x1xf32>
    %66 = arith.addf %64, %65 : vector<4x1xf32>
    %67 = arith.divf %61, %66 : vector<4x1xf32>
    %cst_23 = arith.constant 9.99999993E-9 : f32
    %68 = vector.broadcast %cst_23 : f32 to vector<4x1xf32>
    %69 = arith.addf %67, %68 : vector<4x1xf32>
    %70 = math.log %69 : vector<4x1xf32>
    %cst_24 = arith.constant 4.34294462 : f32
    %71 = vector.broadcast %cst_24 : f32 to vector<4x1xf32>
    %72 = arith.mulf %71, %70 : vector<4x1xf32>
    %73 = vector.shape_cast %72 : vector<4x1xf32> to vector<1x4x1xf32>
    %cst_25 = arith.constant dense<0.000000e+00> : vector<1xf32>
    %74 = vector.multi_reduction <add>, %73, %cst_25 [1, 2] : vector<1x4x1xf32> to vector<1xf32>
    %75 = vector.shape_cast %74 : vector<1xf32> to vector<1x1x1xf32>
    %76 = vector.extract %75[0, 0, 0] : f32 from vector<1x1x1xf32>
    %cst_26 = arith.constant 4.000000e+00 : f32
    %77 = arith.divf %76, %cst_26 : f32
    %cst_27 = arith.constant 0.000000e+00 : f32
    %78 = arith.subf %cst_27, %77 : f32
    %cst_28 = arith.constant 5.000000e-01 : f32
    %79 = arith.mulf %cst_28, %78 : f32
    %cst_29 = arith.constant 5.000000e-01 : f32
    %80 = arith.mulf %cst_29, %42 : f32
    %81 = arith.addf %79, %80 : f32
    %c0_30 = arith.constant 0 : index
    %c0_31 = arith.constant 0 : index
    %82 = memref.load %arg2[%c0_30, %c0_31] : memref<1x1xf32, #tpu.memory_space<smem>>
    memref.store %81, %arg2[%c0_30, %c0_31] : memref<1x1xf32, #tpu.memory_space<smem>>
    return
  }
}

</mosaic_0001>

<bundles_post_ra>
// kernel: tpu_custom_call.1
= control target key start
LH: loop header
LB: loop body
LE: loop exit
PB: predicated region body
PF: predicated region fallthrough
CT: control target
= control target key end

     0   :  { %7 = vsyncpa [#allocation3], 0  ;;  %s537_s0 = inlined_call_operand.hbm [shape: f32[8,495], index: 0, kind: input, shape index: {}]   ;;  %s538_s1 = inlined_call_operand.hbm [shape: f32[2,4,512], index: 1, kind: input, shape index: {}]   ;;  %s539_s2 = inlined_call_operand.hbm [shape: f32[1,1], index: 2, kind: output, shape index: {}]  }
   0x1   :  { %8 = vsyncpa [#allocation6], 0 }
   0x2   :  { %9 = vsyncpa [#allocation4], 0  ;;  %s470_s9 = smov [#allocation2]   ;;  %s471_s11 = smov [#allocation5]  }
   0x3   :  { %s16_s10 = sshll.u32 %s470_s9, 4  ;;  %s25_s12 = sshll.u32 %s471_s11, 4  ;;  %s17_s10 = int_to_ptr.vmem [resolvable:$true] %s16_s10  ;;  %s26_s12 = int_to_ptr.vmem [resolvable:$true] %s25_s12 }
   0x4   :  { %s424_s13 = scalar_lea.vmem %s17_s10, 512  ;;  %p429_p1 = scmp.lt.s32.totalorder %s17_s10, %s17_s10 }
   0x5   :  { %p425_p0 = scmp.ne.s32.totalorder %s17_s10, %s424_s13  ;;  %p430_p2 = scmp.lt.s32.totalorder %s424_s13, %s424_s13 }
   0x7   :  { %p431_p3 = por %p430_p2, %p429_p1 }
   0x9   :  { %p432_p4 = pnand %p431_p3, %p425_p0 }
   0xb   :  { %435 = shalt.err (!%p432_p4)
}
   0xc   :  { %19 = dma.hbm_to_vmem [thread:$0]  %s537_s0, 512, %s17_s10, [#allocation3]  }
   0xd   :  { %s444_s16 = scalar_lea.vmem %s26_s12, 512  ;;  %p449_p6 = scmp.lt.s32.totalorder %s26_s12, %s26_s12 }
   0xe   :  { %p445_p5 = scmp.ne.s32.totalorder %s26_s12, %s444_s16  ;;  %p450_p7 = scmp.lt.s32.totalorder %s444_s16, %s444_s16 }
  0x10   :  { %p451_p8 = por %p450_p7, %p449_p6 }
  0x12   :  { %p452_p9 = pnand %p451_p8, %p445_p5 }
  0x14   :  { %455 = shalt.err (!%p452_p9)
}
  0x15   :  { %s472_s17 = smov 256   ;;  %s473_s18 = smov 16  }
  0x16   :  { %31 = dma.hbm_to_vmem [thread:$0]  %s538_s1, 512, %s26_s12, [#allocation6], %s472_s17, %s472_s17, %s473_s18  }
  0x17   :  { %464 = dma.done.wait [#allocation3], 512  }
  0x18   :  { %465 = vsyncadd [#allocation3], 4294966784 }
  0x19   :  { %466 = dma.done.wait [#allocation6], 512  }
  0x1a   :  { %467 = vsyncadd [#allocation6], 4294966784  ;;  %v38_v0 = vld [vmem:[#allocation2] sm:$0xff]  ;;  %v39_v1 = vld [vmem:[#allocation2 + $0x8] sm:$0xff]  ;;  %vm48_vm0 = vcmask 908288   ;;  %vm266_vm1 = vcmask 1043456  }
  0x1b   :  { %v40_v2 = vld [vmem:[#allocation2 + $0x10] sm:$0xff]  ;;  %v41_v3 = vld [vmem:[#allocation2 + $0x18] sm:$0xff]  ;;  %v42_v4 = vmul.f32 %v38_v0, %v38_v0  ;;  %v43_v5 = vmul.f32 %v39_v1, %v39_v1  ;;  %v499_v14 = vld [vmem:[#allocation5] sm:$0xff]  ;;  %vm221_vm5 = vcmask 64512   ;;  %vm353_vm9 = vcmask 3072   ;;  %s474_s27 = smov [#allocation7]  }
  0x1c   :  { %v44_v6 = vmul.f32 %v40_v2, %v40_v2  ;;  %v45_v7 = vmul.f32 %v41_v3, %v41_v3  ;;  %v256_v12 = vld [vmem:[#allocation5 + $0x10] sm:$0xff]  ;;  %v497_v13 = vld [vmem:[#allocation5 + $0x18] sm:$0xff]  ;;  %v503_v17 = vld [vmem:[#allocation5 + $0x8] sm:$0xff]  ;;  %vm239_vm10 = vcmask 7168  }
  0x1d   :  { %v46_v8 = vadd.f32 %v43_v5, %v42_v4  ;;  %v276_v15 = vmul.f32 %v256_v12, %v256_v12  ;;  %v277_v16 = vmul.f32 %v497_v13, %v497_v13  ;;  %v258_v18 = vmul.f32 %v256_v12, %v499_v14 }
  0x1e   :  { %v49_v9 = vsel %vm48_vm0, %v45_v7, 0.0  ;;  %v259_v19 = vmul.f32 %v497_v13, %v503_v17  ;;  %v298_v54 = vcombine.high %v256_v12, %v256_v12  ;;  %v299_v58 = vcombine.high %v497_v13, %v497_v13 }
  0x1f   :  { %v47_v10 = vadd.f32 %v46_v8, %v44_v6  ;;  %v280_v20 = vcombine.high %v276_v15, %v276_v15  ;;  %v281_v21 = vcombine.high %v277_v16, %v277_v16  ;;  %v284_v22 = vsel %vm266_vm1, %v276_v15, 0.0 }
  0x20   :  { %v262_v23 = vcombine.high %v258_v18, %v258_v18  ;;  %v263_v24 = vcombine.high %v259_v19, %v259_v19  ;;  %v267_v25 = vsel %vm266_vm1, %v258_v18, 0.0  ;;  %v287_v27 = vsel %vm266_vm1, %v277_v16, 0.0 }
  0x21   :  { %v50_v11 = vadd.f32 %v49_v9, %v47_v10  ;;  %v285_v26 = vsel %vm266_vm1, %v280_v20, 0.0  ;;  %v270_v30 = vsel %vm266_vm1, %v259_v19, 0.0  ;;  %v289_v31 = vsel %vm266_vm1, %v281_v21, 0.0 }
  0x22   :  { %v286_v28 = vadd.f32 %v285_v26, %v284_v22  ;;  %v268_v29 = vsel %vm266_vm1, %v262_v23, 0.0  ;;  %v272_v34 = vsel %vm266_vm1, %v263_v24, 0.0 }
  0x23   :  { %51 = vadd.xlane.f32.xlu0 %v50_v11  ;;  %v269_v32 = vadd.f32 %v268_v29, %v267_v25  ;;  %v210_v25 = vlaneseq }
  0x24   :  { %v288_v33 = vadd.f32 %v287_v27, %v286_v28 }
  0x25   :  { %v271_v35 = vadd.f32 %v270_v30, %v269_v32  ;;  %v213_v26 = vand.u32 127, %v210_v25 }
  0x26   :  { %v290_v36 = vadd.f32 %v289_v31, %v288_v33 }
  0x27   :  { %v273_v37 = vadd.f32 %v272_v34, %v271_v35 }
  0x28   :  { %291 = vadd.xlane.f32.xlu0 %v290_v36 }
  0x29   :  { %274 = vadd.xlane.f32.xlu1 %v273_v37 }
  0xac   :  { %v52_v38 = vpop.xlane.xlu0 %51 }
  0xad   :  { %402 = vrsqrt.f32 %v52_v38  ;;  %vm55_vm2 = vcmp.eq.f32.partialorder %v52_v38, inf  ;;  %v58_v41 = vand.u32 2147483648, %v52_v38  ;;  %vm57_vm3 = vcmp.eq.f32.partialorder %v52_v38, 0.0 }
  0xb1   :  { %v292_v50 = vpop.xlane.xlu0 %291 }
  0xb2   :  { %v293_v51 = vadd.f32 1e-08, %v292_v50  ;;  %v275_v53 = vpop.xlane.xlu1 %274 }
  0xba   :  { %v403_v39 = vpop.eup %402 }
  0xbb   :  { %v54_v40 = vmul.f32 %v403_v39, %v52_v38 }
  0xbd   :  { %v56_v42 = vsel %vm55_vm2, %v52_v38, %v54_v40 }
  0xbe   :  { %v59_v43 = vsel %vm57_vm3, %v58_v41, %v56_v42 }
  0xbf   :  { %v60_v44 = vmax.f32 %v59_v43, 1e-08 }
  0xc1   :  { %404 = vrcp.f32 %v60_v44 }
  0xc2   :  { %406 = vrcp.f32 %v293_v51 }
  0xce   :  { %v405_v45 = vpop.eup %404 }
  0xcf   :  { %v63_v46 = vmul.f32 %v405_v45, %v39_v1  ;;  %v65_v47 = vmul.f32 %v405_v45, %v41_v3  ;;  %v62_v48 = vmul.f32 %v405_v45, %v38_v0  ;;  %v64_v49 = vmul.f32 %v405_v45, %v40_v2  ;;  %v407_v52 = vpop.eup %406 }
  0xd0   :  { %v295_v55 = vmul.f32 %v407_v52, %v275_v53 }
  0xd1   :  { %99 = vmatprep.subr.mxu0 %v63_v46  ;;  %133 = vmatprep.mubr.f32.mxu0 %v63_v46 }
  0xd2   :  { %388 = vmatprep.subr.msk.mxu1 %vm48_vm0, %v65_v47  ;;  %389 = vmatprep.mubr.msk.f32.mxu1 %vm48_vm0, %v65_v47  ;;  %v302_v56 = vmul.f32 %v295_v55, %v256_v12  ;;  %v303_v57 = vmul.f32 %v298_v54, %v295_v55  ;;  %v304_v59 = vmul.f32 %v295_v55, %v497_v13 }
  0xd3   :  { %100 = vmatpush1.xpose.msra.mxu0 %v62_v48  ;;  %170 = vmatpush1.xpose.msra.mxu1 %v64_v49  ;;  %v305_v62 = vmul.f32 %v299_v58, %v295_v55 }
  0xd4   :  { %v316_v60 = vmul.f32 %v302_v56, %v302_v56  ;;  %v317_v61 = vmul.f32 %v303_v57, %v303_v57  ;;  %v318_v63 = vmul.f32 %v304_v59, %v304_v59  ;;  %v310_v8 = vcombine.low %v302_v56, %v303_v57 }
  0xd5   :  { %v319_v3 = vmul.f32 %v305_v62, %v305_v62  ;;  %v311_v9 = vcombine.low %v304_v59, %v305_v62 }
  0xd6   :  { %134 = vmatmul.mubr.f32.vlgmr.msra.gmra.mxu0 %v62_v48  ;;  %204 = vmatmul.mubr.f32.vlgmr.msra.gmra.mxu1 %v64_v49  ;;  %v320_v0 = vsel %vm266_vm1, %v316_v60, 0.0  ;;  %v321_v1 = vsel %vm266_vm1, %v317_v61, 0.0  ;;  %v323_v4 = vsel %vm266_vm1, %v318_v63, 0.0  ;;  %v314_v10 = vsub.f32 %v499_v14, %v310_v8 }
  0xd7   :  { %v322_v2 = vadd.f32 %v321_v1, %v320_v0  ;;  %v325_v6 = vsel %vm266_vm1, %v319_v3, 0.0  ;;  %v315_v11 = vsub.f32 %v503_v17, %v311_v9  ;;  %v211_v14 = vshrl.u32 %v210_v25, 7 }
  0xd8   :  { %v329_v12 = vmul.f32 %v314_v10, %v314_v10 }
  0xd9   :  { %v324_v5 = vadd.f32 %v323_v4, %v322_v2  ;;  %v330_v13 = vmul.f32 %v315_v11, %v315_v11  ;;  %v215_v29 = vadd.s32 4, %v211_v14  ;;  %v390_v30 = vadd.s32 4294967292, %v211_v14 }
  0xda   :  { %v333_v15 = vcombine.high %v329_v12, %v329_v12  ;;  %v337_v18 = vsel %vm266_vm1, %v329_v12, 0.0  ;;  %vm214_vm4 = vcmp.eq.s32.totalorder %v211_v14, %v213_v26 }
  0xdb   :  { %v326_v7 = vadd.f32 %v325_v6, %v324_v5  ;;  %v334_v16 = vcombine.high %v330_v13, %v330_v13  ;;  %v340_v20 = vsel %vm266_vm1, %v330_v13, 0.0  ;;  %vm216_vm6 = vcmp.eq.s32.totalorder %v213_v26, %v215_v29 }
  0xdc   :  { %v338_v19 = vsel %vm266_vm1, %v333_v15, 0.0  ;;  %vm218_vm7 = vcmp.eq.s32.totalorder %v213_v26, %v390_v30 }
  0xdd   :  { %v339_v21 = vadd.f32 %v338_v19, %v337_v18  ;;  %v342_v22 = vsel %vm266_vm1, %v334_v16, 0.0  ;;  %vm219_vm8 = vmor %vm216_vm6, %vm218_vm7 }
  0xdf   :  { %v341_v23 = vadd.f32 %v340_v20, %v339_v21 }
  0xe1   :  { %v343_v24 = vadd.f32 %v342_v22, %v341_v23 }
  0xe3   :  { %344 = vadd.xlane.f32.xlu0 %v343_v24 }
 0x16c   :  { %v345_v38 = vpop.xlane.xlu0 %344 }
 0x16d   :  { %v346_v39 = vadd.f32 1e-08, %v345_v38 }
 0x16f   :  { %408 = vrcp.f32 %v346_v39 }
 0x17c   :  { %v409_v42 = vpop.eup %408 }
 0x196   :  { %v135_v17 = vpop.f32.mrf.mxu0  ;;  %v205_v27 = vpop.f32.mrf.mxu1 }
 0x197   :  { %v206_v28 = vadd.f32 %v205_v27, %v135_v17 }
 0x198   :  { %v137_v31 = vpop.f32.mrf.mxu0  ;;  %v207_v32 = vpop.f32.mrf.mxu1 }
 0x199   :  { %v209_v33 = vmul.f32 5.0, %v206_v28 }
 0x19b   :  { %v220_v34 = vsel %vm214_vm4, -1e+30, %v209_v33  ;;  %v234_v36 = vsel %vm219_vm8, %v209_v33, 0.0 }
 0x19c   :  { %v222_v35 = vsel %vm221_vm5, %v220_v34, -inf  ;;  %v235_v37 = vsel %vm221_vm5, %v234_v36, 0.0 }
 0x19d   :  { %223 = vmax.xlane.f32.xlu1 %v222_v35 }
 0x1a1   :  { %327 = vadd.xlane.f32.xlu1 %v326_v7 }
 0x1a5   :  { %236 = vadd.xlane.f32.xlu1 %v235_v37 }
 0x226   :  { %v224_v40 = vpop.xlane.xlu1 %223 }
 0x227   :  { %v225_v41 = vsub.f32 %v220_v34, %v224_v40 }
 0x229   :  { %v226_v43 = vmul.f32 1.442695, %v225_v41 }
 0x22a   :  { %v328_v44 = vpop.xlane.xlu1 %327 }
 0x22b   :  { %410 = vpow2.f32 %v226_v43  ;;  %v348_v45 = vmul.f32 %v409_v42, %v328_v44 }
 0x22d   :  { %v349_v46 = vadd.f32 1e-08, %v348_v45 }
 0x22e   :  { %v237_v57 = vpop.xlane.xlu1 %236 }
 0x22f   :  { %412 = vlog2.f32 %v349_v46 }
 0x238   :  { %v411_v47 = vpop.eup %410 }
 0x239   :  { %v228_v48 = vsel %vm221_vm5, %v411_v47, 0.0 }
 0x23a   :  { %229 = vadd.xlane.f32.xlu0 %v228_v48 }
 0x23c   :  { %v413_v49 = vpop.eup %412 }
 0x23d   :  { %v351_v50 = vmul.f32 0.6931472, %v413_v49 }
 0x23f   :  { %v352_v51 = vmul.f32 4.3429446, %v351_v50 }
 0x241   :  { %v354_v52 = vsel %vm353_vm9, %v352_v51, 0.0 }
 0x242   :  { %355 = vadd.xlane.f32.xlu1 %v354_v52 }
 0x2c3   :  { %v230_v53 = vpop.xlane.xlu0 %229 }
 0x2c4   :  { %414 = vlog2.f32 %v230_v53 }
 0x2cb   :  { %v356_v60 = vpop.xlane.xlu1 %355 }
 0x2cc   :  { %v357_v61 = vrot.slane %v356_v60, 4 }
 0x2ce   :  { %v358_v62 = vadd.f32 %v357_v61, %v356_v60 }
 0x2d0   :  { %v359_v63 = vrot.slane %v358_v62, 2 }
 0x2d1   :  { %v415_v54 = vpop.eup %414 }
 0x2d2   :  { %v232_v55 = vmul.f32 0.6931472, %v415_v54  ;;  %v360_v3 = vadd.f32 %v359_v63, %v358_v62 }
 0x2d4   :  { %v233_v56 = vadd.f32 %v232_v55, %v224_v40  ;;  %v361_v6 = vrot.slane %v360_v3, 1 }
 0x2d6   :  { %v238_v58 = vsub.f32 %v233_v56, %v237_v57  ;;  %v362_v9 = vadd.f32 %v361_v6, %v360_v3 }
 0x2d8   :  { %v240_v59 = vsel %vm239_vm10, %v238_v58, 0.0 }
 0x2d9   :  { %241 = vadd.xlane.f32.xlu0 %v240_v59 }
 0x362   :  { %v242_v0 = vpop.xlane.xlu0 %241 }
 0x363   :  { %v243_v1 = vrot.slane %v242_v0, 4 }
 0x365   :  { %v244_v2 = vadd.f32 %v243_v1, %v242_v0 }
 0x367   :  { %v245_v4 = vrot.slane %v244_v2, 2 }
 0x369   :  { %v246_v5 = vadd.f32 %v245_v4, %v244_v2 }
 0x36b   :  { %v247_v7 = vrot.slane %v246_v5, 1 }
 0x36d   :  { %v248_v8 = vadd.f32 %v247_v7, %v246_v5 }
 0x36f   :  { %391 = vpush %v248_v8 }
 0x370   :  { %393 = vpush %v362_v9 }
 0x3a0   :  { %s392_s0 = spop %391 }
 0x3a1   :  { %s252_s1 = smul.f32 0.125, %s392_s0  ;;  %s394_s21 = spop %393 }
 0x3a2   :  { %s366_s22 = smul.f32 0.25, %s394_s21 }
 0x3a3   :  { %s369_s24 = smul.f32 0.5, %s252_s1 }
 0x3a4   :  { %s367_s23 = ssub.f32 0.0, %s366_s22 }
 0x3a6   :  { %s368_s25 = smul.f32 0.5, %s367_s23 }
 0x3a8   :  { %s370_s26 = sadd.f32 %s369_s24, %s368_s25 }
 0x3aa   :  { %372 = sst [smem:[#allocation7]] %s370_s26 }
 0x3ab   :  { %380 = dma.smem_to_hbm %s474_s27, 16, %s539_s2, [#allocation4]  }
 0x3ac   :  { %468 = dma.done.wait [#allocation4], 16  }
 0x3ad   :  { %469 = vsyncadd [#allocation4], 4294967280 }
 0x3ae   :  { %384 = sfence }
 0x3af   :  { %385 = vsyncpa [#allocation3], 1 }
 0x3b0   :  { %386 = vsyncpa [#allocation6], 1 }
 0x3b1   :  { %387 = vsyncpa [#allocation4], 1 }

</bundles_post_ra>
